<compile_context>
chip_gen: v7x
topology: tpu7x:2x2x1
jax: 0.10.0
libtpu: 0.0.40
codegen_flags: <defaults>
</compile_context>

<pallas_src>
import functools

import jax
import jax.numpy as jnp
import numpy as np
from jax.experimental import pallas as pl
from jax.experimental.pallas import tpu as pltpu

LANE = 128
SUBLANE = 8


def _round_up(x, m):
    return ((x + m - 1) // m) * m


# ---------------------------------------------------------------------------
# Kernel: one batch tile of the fused EKGRL forward pass.
#   x_ref   : (tile_b, Kp)  bf16 -- [img_feat | txt_feat], zero-padded K
#   lab_ref : (tile_b, 2)   f32  -- col 0 = is_head, col 1 = answer
#   a_ref   : (Kp, D2p)     bf16 -- folded/fused first-layer weights (resident)
#   w_ref   : (4, D2p)      f32  -- row0=b1, row1=w2_head, row2=w2_tail,
#                                   row3 lane0=b2e lane1=b2r      (resident)
#   out_ref : (8, tile_b)   f32  -- sublane 0 = logits, sublane 1 = BCE
# ---------------------------------------------------------------------------
def ekgrl_kernel(x_ref, lab_ref, a_ref, w_ref, out_ref):
    f32 = jnp.float32
    tb = out_ref.shape[1]

    # Single fused MXU push (projections + both branches folded), f32 accum.
    h = jnp.dot(x_ref[...], a_ref[...], preferred_element_type=f32)
    h = jnp.maximum(h + w_ref[0:1, :], 0.0)           # bias + ReLU
    # Dropout(0.8) == identity at inference.

    is_head = lab_ref[:, 0:1]
    y = lab_ref[:, 1:2]
    not_head = 1.0 - is_head

    # logits = head + (1-is_head)*tail, collapsed into one lane reduction.
    wc = w_ref[1:2, :] + not_head * w_ref[2:3, :]      # (tile_b, D2p)
    logits = (jnp.sum(h * wc, axis=-1, keepdims=True)
              + w_ref[3:4, 0:1] + not_head * w_ref[3:4, 1:2])

    # Stable per-example BCE-with-logits; the batch mean (over real rows only)
    # is taken in the wrapper so the grid axis stays fully parallel.
    bce = (jnp.maximum(logits, 0.0) - logits * y
           + jnp.log1p(jnp.exp(-jnp.abs(logits))))

    # Lane-dense packed output slab: batch along lanes, unmasked stores.
    col = jax.lax.broadcasted_iota(jnp.int32, (tb, out_ref.shape[0]), 1)
    packed = jnp.where(col == 0, logits, jnp.where(col == 1, bce, 0.0))
    out_ref[...] = packed.T                            # (8, tile_b)


# ---------------------------------------------------------------------------
# Offline parameter fold / pack (run once, outside the step function).
# Weights are stored pre-transposed as (in_features, out_features): y = x@W+b.
# ---------------------------------------------------------------------------
def prepare_params(p):
    D = p["W1e"].shape[1]                         # projection_dim
    clip_dim = p["W_img"].shape[0]
    D2, K = 2 * D, 2 * clip_dim
    D2p, Kp = _round_up(D2, LANE), _round_up(K, LANE)

    # Fuse e/r branches along N: columns [0:D] -> F_theta_e, [D:2D] -> F_theta_r.
    W1_top = jnp.concatenate([p["W1e"][:D, :], p["W1r"][:D, :]], axis=1)   # (D, 2D)
    W1_bot = jnp.concatenate([p["W1e"][D:, :], p["W1r"][D:, :]], axis=1)   # (D, 2D)

    # Fold image/text projection Linears; fuse img/txt operands along K.
    A = jnp.concatenate([p["W_img"] @ W1_top, p["W_txt"] @ W1_bot], axis=0)  # (2*clip, 2D)
    b1 = (p["b_img"] @ W1_top + p["b_txt"] @ W1_bot
          + jnp.concatenate([p["b1e"], p["b1r"]], axis=1))                   # (1, 2D)

    zeros = jnp.zeros((1, D), jnp.float32)
    w2_head = jnp.concatenate([p["W2e"].T, zeros], axis=1)                   # (1, 2D)
    w2_tail = jnp.concatenate([zeros, p["W2r"].T], axis=1)                   # (1, 2D)
    b2_row = jnp.zeros((1, D2), jnp.float32)
    b2_row = b2_row.at[0, 0].set(p["b2e"][0, 0]).at[0, 1].set(p["b2r"][0, 0])

    wpack = jnp.concatenate([b1, w2_head, w2_tail, b2_row], axis=0)          # (4, 2D)
    wpack = jnp.pad(wpack, ((0, 0), (0, D2p - D2))).astype(jnp.float32)
    # Fold is exact in f32; only the MXU operand is cast to bf16.
    A = jnp.pad(A, ((0, Kp - K), (0, D2p - D2))).astype(jnp.bfloat16)
    return A, wpack


@functools.partial(jax.jit, static_argnames=("tile_b",))
def ekgrl_forward(img_feat, txt_feat, is_head, answer, A, wpack, *, tile_b=256):
    B, clip_dim = img_feat.shape
    Kp, D2p = A.shape

    # Batch tiling: one big tile for small B, else tile_b rows per grid step.
    # (v7x: keep >=2 parallel steps when B is large enough to feed both TCs.)
    tile_b = max(SUBLANE, _round_up(min(tile_b, B), SUBLANE))
    nb = pl.cdiv(B, tile_b)
    B_pad = nb * tile_b

    x = jnp.concatenate([img_feat, txt_feat], axis=1).astype(jnp.float32)
    x = jnp.pad(x, ((0, B_pad - B), (0, Kp - 2 * clip_dim))).astype(jnp.bfloat16)
    labels = jnp.stack([is_head.astype(jnp.float32).reshape(B),
                        answer.astype(jnp.float32).reshape(B)], axis=1)
    labels = jnp.pad(labels, ((0, B_pad - B), (0, 0)))

    row = lambda i: (i, 0)       # batch-tiled activations / outputs
    res = lambda i: (0, 0)       # weights stay resident in VMEM across the grid

    flops = 2 * B_pad * Kp * D2p + 6 * B_pad * D2p
    bytes_accessed = (2 * B_pad * Kp + 2 * Kp * D2p                  # bf16
                      + 4 * (2 * B_pad + 4 * D2p + 8 * B_pad))       # f32
    cost = pl.CostEstimate(flops=int(flops), transcendentals=int(2 * B_pad),
                           bytes_accessed=int(bytes_accessed))

    # TODO(synk): for v7x at production clip_dim/tile_b, single-buffer the
    # resident weight specs (pipeline_mode=pl.Buffered(1)) and set
    # vmem_limit_bytes in CompilerParams; unnecessary at these sizes.
    out = pl.pallas_call(
        ekgrl_kernel,
        out_shape=jax.ShapeDtypeStruct((8 * nb, tile_b), jnp.float32),
        grid_spec=pltpu.PrefetchScalarGridSpec(
            num_scalar_prefetch=0,
            grid=(nb,),
            in_specs=[
                pl.BlockSpec((tile_b, Kp), row),     # [img | txt] activations
                pl.BlockSpec((tile_b, 2), row),      # [is_head, answer]
                pl.BlockSpec((Kp, D2p), res),        # fused first-layer weights
                pl.BlockSpec((4, D2p), res),         # packed epilogue weights
            ],
            out_specs=pl.BlockSpec((8, tile_b), row)),
        compiler_params=pltpu.CompilerParams(
            dimension_semantics=("parallel",)),
        cost_estimate=cost,
    )(x, labels, A, wpack)

    out = out.reshape(nb, 8, tile_b)
    logits = out[:, 0, :].reshape(B_pad)[:B]
    per_bce = out[:, 1, :].reshape(B_pad)[:B]
    return logits, jnp.mean(per_bce)


def make_params(key, clip_dim, proj_dim):
    ks = jax.random.split(key, 8)
    s = 0.05
    return {
        "W_img": s * jax.random.normal(ks[0], (clip_dim, proj_dim), jnp.float32),
        "b_img": s * jax.random.normal(ks[1], (1, proj_dim), jnp.float32),
        "W_txt": s * jax.random.normal(ks[2], (clip_dim, proj_dim), jnp.float32),
        "b_txt": s * jax.random.normal(ks[3], (1, proj_dim), jnp.float32),
        "W1e": s * jax.random.normal(ks[4], (2 * proj_dim, proj_dim), jnp.float32),
        "b1e": jnp.zeros((1, proj_dim), jnp.float32),
        "W2e": s * jax.random.normal(ks[5], (proj_dim, 1), jnp.float32),
        "b2e": jnp.zeros((1, 1), jnp.float32),
        "W1r": s * jax.random.normal(ks[6], (2 * proj_dim, proj_dim), jnp.float32),
        "b1r": jnp.zeros((1, proj_dim), jnp.float32),
        "W2r": s * jax.random.normal(ks[7], (proj_dim, 1), jnp.float32),
        "b2r": jnp.zeros((1, 1), jnp.float32),
    }


def ekgrl_reference(img_feat, txt_feat, is_head, answer, p):
    """Unfolded, faithful-to-PyTorch f32 reference path."""
    img_p = img_feat @ p["W_img"] + p["b_img"]
    txt_p = txt_feat @ p["W_txt"] + p["b_txt"]
    comb = jnp.concatenate([img_p, txt_p], axis=-1)
    h_e = jnp.maximum(comb @ p["W1e"] + p["b1e"], 0.0)
    head = h_e @ p["W2e"] + p["b2e"]
    h_r = jnp.maximum(comb @ p["W1r"] + p["b1r"], 0.0)
    tail = h_r @ p["W2r"] + p["b2r"]
    logits = (head + tail * (1.0 - is_head)[:, None])[:, 0]
    y = answer.astype(jnp.float32)
    per = jnp.maximum(logits, 0.0) - logits * y + jnp.log1p(jnp.exp(-jnp.abs(logits)))
    return logits, jnp.mean(per)


if __name__ == "__main__":
    B, CLIP_DIM, PROJ_DIM, TILE_B = 32, 48, 32, 16   # 2 parallel grid steps

    key = jax.random.PRNGKey(0)
    k_img, k_txt, k_hd, k_ans, k_par = jax.random.split(key, 5)

    # Stand-ins for clip_model.encode_image / encode_text outputs.
    img_feat = jax.random.normal(k_img, (B, CLIP_DIM), jnp.float32)
    txt_feat = jax.random.normal(k_txt, (B, CLIP_DIM), jnp.float32)
    # Stand-ins for kg_retriever-derived head-entity flags and binary labels.
    is_head = jax.random.bernoulli(k_hd, 0.5, (B,)).astype(jnp.float32)
    answer = jax.random.bernoulli(k_ans, 0.5, (B,)).astype(jnp.float32)

    params = make_params(k_par, CLIP_DIM, PROJ_DIM)

    # Fold/pack parameters once (hoisted out of the step function).
    A, wpack = jax.block_until_ready(prepare_params(params))

    logits, loss = ekgrl_forward(img_feat, txt_feat, is_head, answer, A, wpack,
                                 tile_b=TILE_B)
    jax.block_until_ready((logits, loss))

    ref_logits, ref_loss = ekgrl_reference(img_feat, txt_feat, is_head, answer, params)
    # bf16 MXU operands -> loosened tolerance vs the f32 reference.
    np.testing.assert_allclose(np.asarray(logits), np.asarray(ref_logits),
                               rtol=2e-2, atol=2e-2)
    np.testing.assert_allclose(float(loss), float(ref_loss), rtol=2e-2, atol=2e-2)

    # TODO(synk): clip_model encoders and kg_retriever concept matching are
    # external, non-tensor dependencies; their outputs are provided as inputs.
    print("KERNEL_OK")
</pallas_src>

<mosaic_0001>
module attributes {stable_mosaic.version = 11 : i64} {
  func.func @ekgrl_kernel(%arg0: i32, %arg1: memref<16x128xbf16, #tpu.memory_space<vmem>>, %arg2: memref<16x2xf32, #tpu.memory_space<vmem>>, %arg3: memref<128x128xbf16, #tpu.memory_space<vmem>>, %arg4: memref<4x128xf32, #tpu.memory_space<vmem>>, %arg5: memref<8x16xf32, #tpu.memory_space<vmem>>) attributes {dimension_semantics = [#tpu.dimension_semantics<parallel>], iteration_bounds = array<i64: 2>, scalar_prefetch = 0 : i64, scratch_operands = 0 : i64, tpu.core_type = #tpu.core_type<tc>, window_params = [{transform_indices = @transform_0, window_bounds = array<i64: 16, 128>}, {transform_indices = @transform_1, window_bounds = array<i64: 16, 2>}, {pipeline_mode = #tpu.pipeline_mode<synchronous>, transform_indices = @transform_2, window_bounds = array<i64: 128, 128>}, {pipeline_mode = #tpu.pipeline_mode<synchronous>, transform_indices = @transform_3, window_bounds = array<i64: 4, 128>}, {transform_indices = @transform_4, window_bounds = array<i64: 8, 16>}]} {
    %c0 = arith.constant 0 : index
    %c0_0 = arith.constant 0 : index
    %0 = vector.load %arg1[%c0, %c0_0] : memref<16x128xbf16, #tpu.memory_space<vmem>>, vector<16x128xbf16>
    %c0_1 = arith.constant 0 : index
    %c0_2 = arith.constant 0 : index
    %1 = vector.load %arg3[%c0_1, %c0_2] : memref<128x128xbf16, #tpu.memory_space<vmem>>, vector<128x128xbf16>
    %cst = arith.constant dense<0.000000e+00> : vector<16x128xf32>
    %2 = tpu.matmul %0, %1, %cst {dimension_numbers = #tpu.dot_dimension_numbers<[1], [0], [0], [1], [0, 0, 1, 1], [], []>} : vector<16x128xbf16>, vector<128x128xbf16>, vector<16x128xf32> -> vector<16x128xf32>
    %c0_3 = arith.constant 0 : index
    %c0_4 = arith.constant 0 : index
    %3 = vector.load %arg4[%c0_3, %c0_4] : memref<4x128xf32, #tpu.memory_space<vmem>>, vector<1x128xf32>
    %4 = vector.broadcast %3 : vector<1x128xf32> to vector<16x128xf32>
    %5 = arith.addf %2, %4 : vector<16x128xf32>
    %cst_5 = arith.constant 0.000000e+00 : f32
    %6 = vector.broadcast %cst_5 : f32 to vector<16x128xf32>
    %7 = arith.maximumf %5, %6 : vector<16x128xf32>
    %c0_6 = arith.constant 0 : index
    %c0_7 = arith.constant 0 : index
    %8 = vector.load %arg2[%c0_6, %c0_7] : memref<16x2xf32, #tpu.memory_space<vmem>>, vector<16x1xf32>
    %c0_8 = arith.constant 0 : index
    %c1 = arith.constant 1 : index
    %9 = vector.load %arg2[%c0_8, %c1] : memref<16x2xf32, #tpu.memory_space<vmem>>, vector<16x1xf32>
    %cst_9 = arith.constant 1.000000e+00 : f32
    %10 = vector.broadcast %cst_9 : f32 to vector<16x1xf32>
    %11 = arith.subf %10, %8 : vector<16x1xf32>
    %c1_10 = arith.constant 1 : index
    %c0_11 = arith.constant 0 : index
    %12 = vector.load %arg4[%c1_10, %c0_11] : memref<4x128xf32, #tpu.memory_space<vmem>>, vector<1x128xf32>
    %c2 = arith.constant 2 : index
    %c0_12 = arith.constant 0 : index
    %13 = vector.load %arg4[%c2, %c0_12] : memref<4x128xf32, #tpu.memory_space<vmem>>, vector<1x128xf32>
    %14 = vector.broadcast %11 : vector<16x1xf32> to vector<16x128xf32>
    %15 = vector.broadcast %13 : vector<1x128xf32> to vector<16x128xf32>
    %16 = arith.mulf %14, %15 : vector<16x128xf32>
    %17 = vector.broadcast %12 : vector<1x128xf32> to vector<16x128xf32>
    %18 = arith.addf %17, %16 : vector<16x128xf32>
    %19 = arith.mulf %7, %18 : vector<16x128xf32>
    %cst_13 = arith.constant dense<0.000000e+00> : vector<16xf32>
    %20 = vector.multi_reduction <add>, %19, %cst_13 [1] : vector<16x128xf32> to vector<16xf32>
    %21 = vector.shape_cast %20 : vector<16xf32> to vector<16x1xf32>
    %c3 = arith.constant 3 : index
    %c0_14 = arith.constant 0 : index
    %22 = vector.load %arg4[%c3, %c0_14] : memref<4x128xf32, #tpu.memory_space<vmem>>, vector<1x1xf32>
    %23 = vector.broadcast %22 : vector<1x1xf32> to vector<16x1xf32>
    %24 = arith.addf %21, %23 : vector<16x1xf32>
    %c3_15 = arith.constant 3 : index
    %c1_16 = arith.constant 1 : index
    %25 = vector.load %arg4[%c3_15, %c1_16] : memref<4x128xf32, #tpu.memory_space<vmem>>, vector<1x1xf32>
    %26 = vector.broadcast %25 : vector<1x1xf32> to vector<16x1xf32>
    %27 = arith.mulf %11, %26 : vector<16x1xf32>
    %28 = arith.addf %24, %27 : vector<16x1xf32>
    %cst_17 = arith.constant 0.000000e+00 : f32
    %29 = vector.broadcast %cst_17 : f32 to vector<16x1xf32>
    %30 = arith.maximumf %28, %29 : vector<16x1xf32>
    %31 = arith.mulf %28, %9 : vector<16x1xf32>
    %32 = arith.subf %30, %31 : vector<16x1xf32>
    %33 = math.absf %28 : vector<16x1xf32>
    %cst_18 = arith.constant 0.000000e+00 : f32
    %34 = vector.broadcast %cst_18 : f32 to vector<16x1xf32>
    %35 = arith.subf %34, %33 : vector<16x1xf32>
    %36 = math.exp %35 : vector<16x1xf32>
    %37 = math.log1p %36 : vector<16x1xf32>
    %38 = arith.addf %32, %37 : vector<16x1xf32>
    %39 = tpu.iota {dimensions = array<i32: 1>} : vector<16x8xi32>
    %c0_i32 = arith.constant 0 : i32
    %40 = vector.broadcast %c0_i32 : i32 to vector<16x8xi32>
    %41 = arith.cmpi eq, %39, %40 : vector<16x8xi32>
    %c1_i32 = arith.constant 1 : i32
    %42 = vector.broadcast %c1_i32 : i32 to vector<16x8xi32>
    %43 = arith.cmpi eq, %39, %42 : vector<16x8xi32>
    %cst_19 = arith.constant 0.000000e+00 : f32
    %44 = vector.shape_cast %38 : vector<16x1xf32> to vector<16x1xf32>
    %45 = vector.broadcast %44 : vector<16x1xf32> to vector<16x8xf32>
    %46 = vector.broadcast %cst_19 : f32 to vector<16x8xf32>
    %47 = arith.select %43, %45, %46 : vector<16x8xi1>, vector<16x8xf32>
    %48 = vector.shape_cast %28 : vector<16x1xf32> to vector<16x1xf32>
    %49 = vector.broadcast %48 : vector<16x1xf32> to vector<16x8xf32>
    %50 = arith.select %41, %49, %47 : vector<16x8xi1>, vector<16x8xf32>
    %51 = tpu.transpose %50, [1, 0] : vector<16x8xf32> -> vector<8x16xf32>
    %c0_20 = arith.constant 0 : index
    %c0_21 = arith.constant 0 : index
    %52 = vector.load %arg5[%c0_20, %c0_21] : memref<8x16xf32, #tpu.memory_space<vmem>>, vector<8x16xf32>
    tpu.vector_store %arg5[%c0_20, %c0_21], %51 {strides = array<i32>} : memref<8x16xf32, #tpu.memory_space<vmem>>, vector<8x16xf32>,
    return
  }
  func.func @transform_0(%arg0: i32) -> (i32, i32) {
    %c0_i32 = arith.constant 0 : i32
    %c0_i32_0 = arith.constant 0 : i32
    return %arg0, %c0_i32 : i32, i32
  }
  func.func @transform_1(%arg0: i32) -> (i32, i32) {
    %c0_i32 = arith.constant 0 : i32
    %c0_i32_0 = arith.constant 0 : i32
    return %arg0, %c0_i32 : i32, i32
  }
  func.func @transform_2(%arg0: i32) -> (i32, i32) {
    %c0_i32 = arith.constant 0 : i32
    %c0_i32_0 = arith.constant 0 : i32
    %c0_i32_1 = arith.constant 0 : i32
    return %c0_i32, %c0_i32_0 : i32, i32
  }
  func.func @transform_3(%arg0: i32) -> (i32, i32) {
    %c0_i32 = arith.constant 0 : i32
    %c0_i32_0 = arith.constant 0 : i32
    %c0_i32_1 = arith.constant 0 : i32
    return %c0_i32, %c0_i32_0 : i32, i32
  }
  func.func @transform_4(%arg0: i32) -> (i32, i32) {
    %c0_i32 = arith.constant 0 : i32
    %c0_i32_0 = arith.constant 0 : i32
    return %arg0, %c0_i32 : i32, i32
  }
}

</mosaic_0001>

<bundles_post_ra>
// kernel: squeeze.2
= control target key start
LH: loop header
LB: loop body
LE: loop exit
PB: predicated region body
PF: predicated region fallthrough
CT: control target
= control target key end

     0   :  { %s85_s0 = inlined_call_operand.vmem [shape: f32[2,1,16], index: 0, kind: input, shape index: {}]   ;;  %s86_s1 = inlined_call_operand.hbm [shape: f32[32], index: 1, kind: output, shape index: {}]  }
   0x1   :  { %v5_v0 = vld [vmem:[%s85_s0] sm:$0x3] }
   0x2   :  { %6 = vst [vmem:[#allocation3] sm:$0x3] %v5_v0 }
   0x3   :  { %2 = vsyncpa [#allocation1], 0  ;;  %vm8_vm0 = vcmask 130048   ;;  %s58_s0 = smov 16   ;;  %vm14_vm1 = vcmask 261248   ;;  %s59_s8 = smov [#allocation0]  }
   0x4   :  { %s26_s9 = sshll.u32 %s59_s8, 4  ;;  %s27_s9 = int_to_ptr.vmem [resolvable:$true] %s26_s9 }
   0x5   :  { %s34_s10 = scalar_lea.vmem %s27_s9, 16  ;;  %s38_s11 = scalar_lea.vmem %s27_s9, 32 }
   0x6   :  { %p35_p0 = scmp.ne.s32.totalorder %s27_s9, %s34_s10  ;;  %p39_p1 = scmp.lt.s32.totalorder %s27_s9, %s27_s9 }
   0x7   :  { %p40_p2 = scmp.lt.s32.totalorder %s38_s11, %s34_s10 }
   0x9   :  { %v11_v1 = vld [vmem:[#allocation3 + $0x1] sm:$0x1]   ;;  %v7_v2 = vld [vmem:[#allocation3] sm:$0x1]   ;;  %p41_p3 = por %p40_p2, %p39_p1 }
   0xa   :  { %12 = vrot.lane.b32.xlu0 %v11_v1, %s58_s0  ;;  %9 = vst.msk [vmem:[#allocation2] sm:$0x1] %vm8_vm0, %v7_v2  }
   0xb   :  { %p42_p4 = pnand %p41_p3, %p35_p0 }
  0x7c   :  { %v13_v3 = vpop.permute.xlu0 %12  }
  0x7d   :  { %15 = vst.msk [vmem:[#allocation2] sm:$0x1] %vm14_vm1, %v13_v3  }
  0x84   :  { %v19_v4 = vld [vmem:[#allocation2] sm:$0x1] }
  0x85   :  { %21 = vst [vmem:[#allocation0] sm:$0x1] %v19_v4 }
  0x86   :  { %45 = shalt.err (!%p42_p4)
}
  0x87   :  { %s46_s14 = scalar_lea.hbm %s86_s1, 16 }
  0x88   :  { %p47_p5 = scmp.ne.s32.totalorder %s86_s1, %s46_s14  ;;  %p50_p6 = scmp.lt.u32.totalorder %s46_s14, %s86_s1 }
  0x8a   :  { %p52_p7 = pnand %p50_p6, %p47_p5 }
  0x8c   :  { %55 = shalt.err (!%p52_p7)
}
  0x8d   :  { %29 = dma.vmem_to_hbm [thread:$0]  %s27_s9, 16, %s86_s1, [#allocation1]  }
  0x8e   :  { %56 = dma.done.wait [#allocation1], 16  }
  0x8f   :  { %57 = vsyncadd [#allocation1], 4294967280 }
  0x90   :  { %31 = vsyncpa [#allocation1], 1 }

// kernel: ekgrl_forward.1
= control target key start
LH: loop header
LB: loop body
LE: loop exit
PB: predicated region body
PF: predicated region fallthrough
CT: control target
= control target key end

     0   :  { %s681_s15 = smov 0   ;;  %s742_s0 = inlined_call_operand.vmem [shape: bf16[32,128], index: 0, kind: input, shape index: {}]   ;;  %s743_s1 = inlined_call_operand.vmem [shape: f32[32,2], index: 1, kind: input, shape index: {}]   ;;  %s744_s2 = inlined_call_operand.vmem [shape: bf16[128,128], index: 2, kind: input, shape index: {}]   ;;  %s745_s3 = inlined_call_operand.vmem [shape: f32[4,128], index: 3, kind: input, shape index: {}]   ;;  %s746_s4 = inlined_call_operand.vmem [shape: f32[16,16], index: 4, kind: output, shape index: {}]  }
   0x1 LB: > { %s687_s16 = sadd.s32 4294967295, %s650_s15   ;;  %p563_p0 = scmp.ge.s32.totalorder %s650_s15, 1  ;;  %s650_s15 = sphi %s681_s15, %s14_s15  }
   0x2   : > { %p174_p1 = scmp.lt.s32.totalorder %s650_s15, 3 }
   0x4   : > { %p175_p2 = pnand %p563_p0, %p174_p1 }
   0x5   : > { %v627_v0 = vld [vmem:[%s744_s2] sm:$0xff] (!%p175_p2)   ;;  %v652_v1 = vmov (!%p175_p2), 0.0   ;;  %v628_v2 = vld [vmem:[%s744_s2 + $0x8] sm:$0xff] (!%p175_p2)   ;;  %vm653_vm0 = vmmov (!%p175_p2), 0   ;;  %s564_s21 = sshll.u32 (!%p175_p2), %s687_s16, 1  ;;  %v654_v3 = vmov (!%p175_p2), 0  }
   0x6   : > { %178 = sbr.rel (%p175_p2) target bundleno = 697 (0x2b9), region = 36  ;;  %593 = vmatprep.subr.bf16.mxu0 (!%p175_p2), %v652_v1  ;;  %609 = vmatprep.mubr.msk.bf16.mxu0 (!%p175_p2), %vm653_vm0, %v652_v1  ;;  %p205_p3 = scmp.lt.s32.totalorder (!%p175_p2), %s564_s21, 3  ;;  %v629_v4 = vld [vmem:[%s744_s2 + $0x10] sm:$0xff] (!%p175_p2)   ;;  %v630_v5 = vld [vmem:[%s744_s2 + $0x18] sm:$0xff] (!%p175_p2)   ;;  %v631_v10 = vld [vmem:[%s744_s2 + $0x20] sm:$0xff] (!%p175_p2)   ;;  %vm492_vm5 = vcmask (!%p175_p2), 130048  }
   0x7   : > { %594 = vmatpush3.bf16.msra.mxu0 (!%p175_p2), %v627_v0  ;;  %625 = vset.pattern.permute.xlu0 (!%p175_p2), %v654_v3  ;;  %v632_v11 = vld [vmem:[%s744_s2 + $0x28] sm:$0xff] (!%p175_p2)   ;;  %v633_v12 = vld [vmem:[%s744_s2 + $0x30] sm:$0xff] (!%p175_p2)   ;;  %v634_v13 = vld [vmem:[%s744_s2 + $0x38] sm:$0xff] (!%p175_p2)   ;;  %s655_s20 = smov (!%p175_p2), 127   ;;  %p216_p4 = scmp.lt.s32.totalorder (!%p175_p2), %s687_s16, 1 }
   0x8   : > { %595 = vmatprep.subr.bf16.mxu0 (!%p175_p2), %v652_v1  ;;  %626 = vset.pattern.permute.xlu1 (!%p175_p2), %v654_v3  ;;  %v581_v15 = vld [vmem:[%s745_s3 + $0x3] ss:$0 sm:$0xff] (!%p175_p2)  ;;  %v579_v16 = vld [vmem:[%s745_s3 + $0x2] ss:$0 sm:$0xff] (!%p175_p2)  ;;  %v580_v19 = vld [vmem:[%s745_s3 + $0x1] ss:$0 sm:$0xff] (!%p175_p2) }
   0x9   : > { %v569_v20 = vld [vmem:[%s745_s3] ss:$0 sm:$0xff] (!%p175_p2) }
   0xb   : > { %596 = vmatpush3.bf16.msra.mxu0 (!%p175_p2), %v628_v2 }
   0xc   : > { %597 = vmatprep.subr.bf16.mxu0 (!%p175_p2), %v652_v1 }
   0xd   : > { %s748_s21 = smov (!%p205_p3, %s564_s21), 3  ;;  %s750_s16 = smov (!%p216_p4, %s687_s16), 1 }
   0xe   : > { %s565_s24 = sshll.u32 %s748_s21, 2  ;;  %s567_s28 = sshll.u32 %s748_s21, 3 }
   0xf   : > { %s208_s27 = scalar_lea.vmem %s742_s0, %s565_s24  ;;  %s214_s5 = scalar_lea.vmem %s743_s1, %s567_s28  ;;  %598 = vmatpush3.bf16.msra.mxu0 %v629_v4 }
  0x10   : > { %v341_v6 = vld [vmem:[%s214_s5] sm:$0xff]  ;;  %v342_v7 = vld [vmem:[%s214_s5 + $0x8] sm:$0xff]  ;;  %599 = vmatprep.subr.bf16.mxu0 %v652_v1 }
  0x11   : > { %v343_v8 = vsub.f32 1.0, %v341_v6  ;;  %v344_v9 = vsub.f32 1.0, %v342_v7  ;;  %v635_v14 = vld [vmem:[%s208_s27] sm:$0xff]   ;;  %s568_s27 = sshll.u32 %s750_s16, 3 }
  0x12   : > { %s219_s30 = scalar_lea.vmem %s746_s4, %s568_s27 }
  0x13   : > { %349 = vperm.xlu0 %625, %v343_v8   ;;  %600 = vmatpush3.bf16.msra.mxu0 %v630_v5 }
  0x14   : > { %601 = vmatprep.subr.bf16.mxu0 %v652_v1 }
  0x17   : > { %354 = vperm.xlu0 %625, %v344_v9   ;;  %602 = vmatpush3.bf16.msra.mxu0 %v631_v10 }
  0x18   : > { %603 = vmatprep.subr.bf16.mxu0 %v652_v1 }
  0x1b   : > { %604 = vmatpush3.bf16.msra.mxu0 %v632_v11  ;;  %383 = vrot.lane.b32.xlu0 %v581_v15, %s655_s20 }
  0x1c   : > { %605 = vmatprep.subr.bf16.mxu0 %v652_v1 }
  0x1f   : > { %606 = vmatpush3.bf16.msra.mxu0 %v633_v12  ;;  %396 = vrot.lane.b32.xlu0 %v342_v7, %s655_s20 }
  0x20   : > { %607 = vmatprep.subr.bf16.mxu0 %v652_v1 }
  0x23   : > { %608 = vmatpush3.bf16.msra.mxu0 %v634_v13 }
  0x26   : > { %610 = vmatmul.mubr.bf16.vlgmr.msra.gmra.mrb[0].mxu0 %v635_v14  ;;  %v432_v14 = vlaneseq }
  0x92   : > { %v350_v17 = vpop.permute.xlu0 %349 }
  0x93   : > { %v361_v18 = vmul.f32 %v579_v16, %v350_v17 }
  0x95   : > { %v367_v25 = vadd.f32 %v580_v19, %v361_v18 }
  0x96   : > { %v355_v21 = vpop.permute.xlu0 %354 }
  0x97   : > { %v362_v27 = vmul.f32 %v579_v16, %v355_v21 }
  0x99   : > { %v368_v33 = vadd.f32 %v580_v19, %v362_v27 }
  0x9a   : > { %v384_v35 = vpop.permute.xlu0 %383 }
  0x9b   : > { %v386_v36 = vmul.f32 %v384_v35, %v343_v8  ;;  %v387_v41 = vmul.f32 %v384_v35, %v344_v9 }
  0x9e   : > { %v397_v60 = vpop.permute.xlu0 %396 }
  0xf9   : > { %v332_v22 = vpop.f32.mrb[0].mxu0 }
  0xfa   : > { %v333_v23 = vadd.f32 %v569_v20, %v332_v22  ;;  %v611_v24 = vpop.f32.mrb[1].mxu0 }
  0xfb   : > { %v335_v26 = vpop.f32.mrb[2].mxu0 }
  0xfc   : > { %v339_v28 = vmax.f32 %v333_v23, 0.0  ;;  %v336_v29 = vadd.f32 %v569_v20, %v335_v26  ;;  %v612_v30 = vpop.f32.mrb[3].mxu0 }
  0xfe   : > { %v340_v31 = vmax.f32 %v336_v29, 0.0  ;;  %v369_v32 = vmul.f32 %v367_v25, %v339_v28 }
 0x100   : > { %371 = vadd.xlane.f32.xlu1 %v369_v32  ;;  %v370_v34 = vmul.f32 %v368_v33, %v340_v31 }
 0x104   : > { %373 = vadd.xlane.f32.xlu1 %v370_v34 }
 0x115   : > { %394 = vrot.lane.b32.xlu1 %v341_v6, %s655_s20 }
 0x18d   : > { %v372_v37 = vpop.xlane.xlu1 %371 }
 0x18e   : > { %v380_v38 = vadd.f32 %v581_v15, %v372_v37 }
 0x190   : > { %v388_v39 = vadd.f32 %v386_v36, %v380_v38 }
 0x191   : > { %v374_v40 = vpop.xlane.xlu1 %373 }
 0x192   : > { %v404_v42 = vand.u32 2147483647, %v388_v39  ;;  %v381_v43 = vadd.f32 %v581_v15, %v374_v40  ;;  %450 = vperm.xlu0 %625, %v388_v39   ;;  %v390_v62 = vmax.f32 %v388_v39, 0.0  ;;  %v433_v15 = vand.u32 127, %v432_v14 }
 0x194   : > { %v406_v44 = vsub.f32 0.0, %v404_v42  ;;  %v389_v45 = vadd.f32 %v387_v41, %v381_v43  ;;  %vm435_vm3 = vcmp.eq.s32.totalorder %v433_v15, 1  ;;  %vm434_vm4 = vcmp.eq.s32.totalorder %v433_v15, 0 }
 0x195   : > { %v395_v55 = vpop.permute.xlu1 %394 }
 0x196   : > { %v408_v46 = vmul.f32 1.442695, %v406_v44  ;;  %v405_v47 = vand.u32 2147483647, %v389_v45  ;;  %455 = vperm.xlu1 %626, %v389_v45   ;;  %v400_v58 = vmul.f32 %v395_v55, %v388_v39  ;;  %v391_v63 = vmax.f32 %v389_v45, 0.0 }
 0x197   : > { %v401_v3 = vmul.f32 %v397_v60, %v389_v45 }
 0x198   : > { %636 = vpow2.f32 %v408_v46  ;;  %v407_v48 = vsub.f32 0.0, %v405_v47  ;;  %v402_v4 = vsub.f32 %v390_v62, %v400_v58 }
 0x199   : > { %v403_v11 = vsub.f32 %v391_v63, %v401_v3 }
 0x19a   : > { %v410_v49 = vmul.f32 1.442695, %v407_v48 }
 0x19c   : > { %638 = vpow2.f32 %v410_v49 }
 0x1a2   : > { %v637_v50 = vpop.eup %636 }
 0x1a3   : > { %v412_v51 = vadd.f32 1.0, %v637_v50  ;;  %v415_v54 = vmul.f32 -0.5, %v637_v50  ;;  %v418_v59 = vand.u32 2147483647, %v637_v50 }
 0x1a5   : > { %640 = vlog2.f32 %v412_v51  ;;  %v416_v56 = vadd.f32 1.0, %v415_v54  ;;  %vm419_vm1 = vcmp.lt.f32.partialorder %v418_v59, 0.0004427343 }
 0x1a6   : > { %v639_v52 = vpop.eup %638 }
 0x1a7   : > { %v421_v53 = vadd.f32 1.0, %v639_v52  ;;  %v424_v57 = vmul.f32 -0.5, %v639_v52  ;;  %v417_v1 = vmul.f32 %v637_v50, %v416_v56  ;;  %v427_v5 = vand.u32 2147483647, %v639_v52 }
 0x1a9   : > { %642 = vlog2.f32 %v421_v53  ;;  %v425_v2 = vadd.f32 1.0, %v424_v57  ;;  %vm428_vm2 = vcmp.lt.f32.partialorder %v427_v5, 0.0004427343 }
 0x1ab   : > { %v426_v10 = vmul.f32 %v639_v52, %v425_v2 }
 0x1af   : > { %v641_v61 = vpop.eup %640 }
 0x1b0   : > { %v414_v0 = vmul.f32 0.6931472, %v641_v61 }
 0x1b2   : > { %v420_v6 = vsel %vm419_vm1, %v417_v1, %v414_v0 }
 0x1b3   : > { %v643_v7 = vpop.eup %642  ;;  %v430_v8 = vadd.f32 %v420_v6, %v402_v4 }
 0x1b4   : > { %v423_v9 = vmul.f32 0.6931472, %v643_v7 }
 0x1b5   : > { %438 = vperm.xlu0 %625, %v430_v8  }
 0x1b6   : > { %v429_v12 = vsel %vm428_vm2, %v426_v10, %v423_v9 }
 0x1b7   : > { %v431_v13 = vadd.f32 %v429_v12, %v403_v11 }
 0x1b9   : > { %443 = vperm.xlu0 %625, %v431_v13  }
 0x211   : > { %v451_v16 = vpop.permute.xlu0 %450 }
 0x215   : > { %v456_v21 = vpop.permute.xlu1 %455 }
 0x234   : > { %v439_v17 = vpop.permute.xlu0 %438 }
 0x235   : > { %v446_v18 = vsel %vm435_vm3, %v439_v17, 0.0 }
 0x236   : > { %v458_v19 = vsel %vm434_vm4, %v451_v16, %v446_v18 }
 0x237   : > { %460 = vxpose.xlu0.b32.start [1/2] (short) (narrow) %v458_v19, 8 }
 0x238   : > { %v444_v20 = vpop.permute.xlu0 %443 }
 0x239   : > { %v447_v22 = vsel %vm435_vm3, %v444_v20, 0.0 }
 0x23a   : > { %v459_v23 = vsel %vm434_vm4, %v456_v21, %v447_v22 }
 0x23b   : > { %461 = vxpose.xlu0.b32.end [2/2] (short) (narrow) %v459_v23, 8 }
 0x2b7   : > { %v476_v24 = vpop.trf.xlu0 }
 0x2b8   : > { %493 = vst.msk [vmem:[%s219_s30] sm:$0xff] %vm492_vm5, %v476_v24 }
 0x2b9 PF: > { %s14_s15 = sadd.s32 1, %s650_s15  }
 0x2ba   : > { %p11_p5 = scmp.ge.s32.totalorder %s14_s15, 4  }
 0x2bc   :  { %13 = sbr.rel (!%p11_p5) target bundleno = 1 (0x1), region = 69 }

</bundles_post_ra>
